<compile_context>
chip_gen: v7x
topology: tpu7x:2x2x1
jax: 0.10.0
libtpu: 0.0.40
codegen_flags: <defaults>
</compile_context>

<pallas_src>
import functools
import math

import jax
import jax.numpy as jnp
from jax.experimental import pallas as pl
from jax.experimental.pallas import tpu as pltpu


def _masked_bce_f32(g, p, m):
    # Matches PyTorch BCELoss: clamp log terms at -100 before the multiply,
    # so pred==0 / pred==1 never produce NaN from 0 * (-inf).
    log_p = jnp.maximum(jnp.log(p), -100.0)
    log_1mp = jnp.maximum(jnp.log(1.0 - p), -100.0)
    bce = -(g * log_p + (1.0 - g) * log_1mp)
    return bce * m


def _plm_kernel_none(gt_ref, pred_ref, mask_ref, out_ref):
    g = gt_ref[...].astype(jnp.float32)
    p = pred_ref[...].astype(jnp.float32)
    m = mask_ref[...].astype(jnp.float32)
    out_ref[...] = _masked_bce_f32(g, p, m).astype(out_ref.dtype)


def _plm_kernel_sums(gt_ref, pred_ref, mask_ref, rowsum_ref, masksum_ref):
    g = gt_ref[...].astype(jnp.float32)
    p = pred_ref[...].astype(jnp.float32)
    m = mask_ref[...].astype(jnp.float32)
    mb = _masked_bce_f32(g, p, m)
    rowsum_ref[...] = jnp.sum(mb, axis=-1, keepdims=True)
    masksum_ref[...] = jnp.sum(m, axis=-1, keepdims=True)


def _choose_row_tile(M, D, bytes_per_elem, target_block_bytes=2 << 20, min_grid=4):
    """Largest row tile (multiple of 8) near target_block_bytes per input block,
    capped so the grid still has >= min_grid steps (v7x megacore sharding)."""
    rows = target_block_bytes // max(1, D * bytes_per_elem)
    rows = max(8, (rows // 8) * 8)
    cap = -(-M // min_grid)                 # cdiv(M, min_grid)
    cap = max(8, ((cap + 7) // 8) * 8)      # round up to multiple of 8
    return int(min(rows, cap))


@functools.partial(jax.jit, static_argnames=("reduction",))
def plm_forward(gt, pred, mask, reduction="none"):
    """Masked BCE loss ("PLM") with Pallas TPU kernels for the hot path."""
    assert gt.shape == pred.shape == mask.shape
    orig_shape = gt.shape
    D = orig_shape[-1]
    M = math.prod(orig_shape[:-1]) if len(orig_shape) > 1 else 1

    gt2 = gt.reshape(M, D)
    pred2 = pred.reshape(M, D)
    mask2 = mask.reshape(M, D)

    bytes_per_elem = 4  # compute is in f32; inputs may be narrower in HBM
    row_tile = _choose_row_tile(M, D, bytes_per_elem)
    grid = (pl.cdiv(M, row_tile),)          # boundary blocks handled by Pallas
    in_spec = pl.BlockSpec((row_tile, D), lambda i: (i, 0))

    block_bytes = row_tile * D * bytes_per_elem
    # Worst case ('none'): 4 full-size streams, double-buffered, + headroom.
    # Keep well within v7x's 64 MiB VMEM; raise above v5e's 16 MiB default.
    vmem_limit = int(min(max(2 * 4 * block_bytes * 1.25, 16 * (1 << 20)),
                         40 * (1 << 20)))
    compiler_params = pltpu.CompilerParams(
        dimension_semantics=("parallel",),
        vmem_limit_bytes=vmem_limit,
    )

    if reduction == "none":
        masked_bce = pl.pallas_call(
            _plm_kernel_none,
            out_shape=jax.ShapeDtypeStruct((M, D), pred.dtype),
            grid_spec=pl.GridSpec(
                grid=grid,
                in_specs=[in_spec, in_spec, in_spec],
                out_specs=pl.BlockSpec((row_tile, D), lambda i: (i, 0)),
            ),
            compiler_params=compiler_params,
            cost_estimate=pl.CostEstimate(
                flops=10 * M * D,
                transcendentals=2 * M * D,
                bytes_accessed=4 * M * D * bytes_per_elem,
            ),
        )(gt2, pred2, mask2)
        return masked_bce.reshape(orig_shape)

    # 'sum' / 'mean': skip the (M, D) HBM write entirely; only per-row sums.
    rowsum, masksum = pl.pallas_call(
        _plm_kernel_sums,
        out_shape=(jax.ShapeDtypeStruct((M, 1), jnp.float32),
                   jax.ShapeDtypeStruct((M, 1), jnp.float32)),
        grid_spec=pl.GridSpec(
            grid=grid,
            in_specs=[in_spec, in_spec, in_spec],
            out_specs=[pl.BlockSpec((row_tile, 1), lambda i: (i, 0)),
                       pl.BlockSpec((row_tile, 1), lambda i: (i, 0))],
        ),
        compiler_params=compiler_params,
        cost_estimate=pl.CostEstimate(
            flops=12 * M * D,
            transcendentals=2 * M * D,
            bytes_accessed=3 * M * D * bytes_per_elem + 2 * M * 4,
        ),
    )(gt2, pred2, mask2)

    rowsum = rowsum[:, 0]
    masksum = masksum[:, 0]
    if reduction == "sum":
        return jnp.mean(rowsum)
    return jnp.mean(rowsum / (masksum + 1e-07))


def _reference(gt, pred, mask, reduction="none"):
    log_p = jnp.maximum(jnp.log(pred), -100.0)
    log_1mp = jnp.maximum(jnp.log(1.0 - pred), -100.0)
    bce = -(gt * log_p + (1.0 - gt) * log_1mp)
    masked = bce * mask
    if reduction == "sum":
        return jnp.mean(jnp.sum(masked, axis=-1))
    elif reduction == "mean":
        return jnp.mean(jnp.sum(masked, axis=-1) / (jnp.sum(mask, axis=-1) + 1e-07))
    return masked


if __name__ == "__main__":
    key = jax.random.PRNGKey(0)
    k1, k2, k3 = jax.random.split(key, 3)

    # Small shapes; N=9 makes M=18 (not a multiple of 8) to exercise the
    # boundary-block path; D=128 maps onto the 128-lane axis.
    B, N, D = 2, 9, 128
    gt = jax.random.uniform(k1, (B, N, D), dtype=jnp.float32)        # targets in [0,1]
    pred = jax.nn.sigmoid(jax.random.normal(k2, (B, N, D)))          # probabilities in (0,1)
    mask = (jax.random.uniform(k3, (B, N, D)) > 0.5).astype(jnp.float32)

    ok = True
    for red in ("none", "sum", "mean"):
        out = jax.block_until_ready(plm_forward(gt, pred, mask, reduction=red))
        ref = _reference(gt, pred, mask, reduction=red)
        if not jnp.allclose(out, ref, atol=1e-5, rtol=1e-5):
            ok = False
            print(f"MISMATCH for reduction={red}")

    if ok:
        print("KERNEL_OK")
</pallas_src>

<mosaic_0001>
module attributes {stable_mosaic.version = 11 : i64} {
  func.func @_plm_kernel_none(%arg0: i32, %arg1: memref<8x128xf32, #tpu.memory_space<vmem>>, %arg2: memref<8x128xf32, #tpu.memory_space<vmem>>, %arg3: memref<8x128xf32, #tpu.memory_space<vmem>>, %arg4: memref<8x128xf32, #tpu.memory_space<vmem>>) attributes {dimension_semantics = [#tpu.dimension_semantics<parallel>], iteration_bounds = array<i64: 3>, scalar_prefetch = 0 : i64, scratch_operands = 0 : i64, tpu.core_type = #tpu.core_type<tc>, window_params = [{transform_indices = @transform_0, window_bounds = array<i64: 8, 128>}, {transform_indices = @transform_1, window_bounds = array<i64: 8, 128>}, {transform_indices = @transform_2, window_bounds = array<i64: 8, 128>}, {transform_indices = @transform_3, window_bounds = array<i64: 8, 128>}]} {
    %c0 = arith.constant 0 : index
    %c0_0 = arith.constant 0 : index
    %0 = vector.load %arg1[%c0, %c0_0] : memref<8x128xf32, #tpu.memory_space<vmem>>, vector<8x128xf32>
    %c0_1 = arith.constant 0 : index
    %c0_2 = arith.constant 0 : index
    %1 = vector.load %arg2[%c0_1, %c0_2] : memref<8x128xf32, #tpu.memory_space<vmem>>, vector<8x128xf32>
    %c0_3 = arith.constant 0 : index
    %c0_4 = arith.constant 0 : index
    %2 = vector.load %arg3[%c0_3, %c0_4] : memref<8x128xf32, #tpu.memory_space<vmem>>, vector<8x128xf32>
    %3 = math.log %1 : vector<8x128xf32>
    %cst = arith.constant -1.000000e+02 : f32
    %4 = vector.broadcast %cst : f32 to vector<8x128xf32>
    %5 = arith.maximumf %3, %4 : vector<8x128xf32>
    %cst_5 = arith.constant 1.000000e+00 : f32
    %6 = vector.broadcast %cst_5 : f32 to vector<8x128xf32>
    %7 = arith.subf %6, %1 : vector<8x128xf32>
    %8 = math.log %7 : vector<8x128xf32>
    %cst_6 = arith.constant -1.000000e+02 : f32
    %9 = vector.broadcast %cst_6 : f32 to vector<8x128xf32>
    %10 = arith.maximumf %8, %9 : vector<8x128xf32>
    %11 = arith.mulf %0, %5 : vector<8x128xf32>
    %cst_7 = arith.constant 1.000000e+00 : f32
    %12 = vector.broadcast %cst_7 : f32 to vector<8x128xf32>
    %13 = arith.subf %12, %0 : vector<8x128xf32>
    %14 = arith.mulf %13, %10 : vector<8x128xf32>
    %15 = arith.addf %11, %14 : vector<8x128xf32>
    %cst_8 = arith.constant 0.000000e+00 : f32
    %16 = vector.broadcast %cst_8 : f32 to vector<8x128xf32>
    %17 = arith.subf %16, %15 : vector<8x128xf32>
    %18 = arith.mulf %17, %2 : vector<8x128xf32>
    %c0_9 = arith.constant 0 : index
    %c0_10 = arith.constant 0 : index
    %19 = vector.load %arg4[%c0_9, %c0_10] : memref<8x128xf32, #tpu.memory_space<vmem>>, vector<8x128xf32>
    tpu.vector_store %arg4[%c0_9, %c0_10], %18 {strides = array<i32>} : memref<8x128xf32, #tpu.memory_space<vmem>>, vector<8x128xf32>,
    return
  }
  func.func @transform_0(%arg0: i32) -> (i32, i32) {
    %c0_i32 = arith.constant 0 : i32
    %c0_i32_0 = arith.constant 0 : i32
    return %arg0, %c0_i32 : i32, i32
  }
  func.func @transform_1(%arg0: i32) -> (i32, i32) {
    %c0_i32 = arith.constant 0 : i32
    %c0_i32_0 = arith.constant 0 : i32
    return %arg0, %c0_i32 : i32, i32
  }
  func.func @transform_2(%arg0: i32) -> (i32, i32) {
    %c0_i32 = arith.constant 0 : i32
    %c0_i32_0 = arith.constant 0 : i32
    return %arg0, %c0_i32 : i32, i32
  }
  func.func @transform_3(%arg0: i32) -> (i32, i32) {
    %c0_i32 = arith.constant 0 : i32
    %c0_i32_0 = arith.constant 0 : i32
    return %arg0, %c0_i32 : i32, i32
  }
}

</mosaic_0001>

<bundles_post_ra>
// kernel: plm_forward.1
= control target key start
LH: loop header
LB: loop body
LE: loop exit
PB: predicated region body
PF: predicated region fallthrough
CT: control target
= control target key end

     0   :  { %s345_s12 = smov 0   ;;  %s368_s0 = inlined_call_operand.vmem [shape: f32[18,128], index: 0, kind: input, shape index: {}]   ;;  %s369_s1 = inlined_call_operand.vmem [shape: f32[18,128], index: 1, kind: input, shape index: {}]   ;;  %s370_s2 = inlined_call_operand.vmem [shape: f32[18,128], index: 2, kind: input, shape index: {}]   ;;  %s371_s3 = inlined_call_operand.vmem [shape: f32[18,128], index: 3, kind: output, shape index: {}]  }
   0x1 LB: > { %s294_s13 = sadd.s32 4294967295, %s323_s12   ;;  %p298_p0 = scmp.ge.s32.totalorder %s323_s12, 1  ;;  %s323_s12 = sphi %s345_s12, %s13_s12  }
   0x2   : > { %p154_p1 = scmp.lt.s32.totalorder %s323_s12, 4 }
   0x4   : > { %p155_p2 = pnand %p298_p0, %p154_p1 }
   0x5   : > { %p184_p3 = scmp.lt.s32.totalorder (!%p155_p2), %s294_s13, 2 }
   0x6   : > { %158 = sbr.rel (%p155_p2) target bundleno = 43 (0x2b), region = 32 }
   0xd   : > { %s373_s13 = smov (!%p184_p3, %s294_s13), 2 }
   0xe   : > { %s299_s14 = sshll.u32 %s373_s13, 3 }
   0xf   : > { %s191_s17 = scalar_lea.vmem %s369_s1, %s299_s14  ;;  %s187_s20 = scalar_lea.vmem %s368_s0, %s299_s14 }
  0x10   : > { %v201_v0 = vld [vmem:[%s191_s17] sm:$0xff]  ;;  %s195_s23 = scalar_lea.vmem %s370_s2, %s299_s14  ;;  %s199_s26 = scalar_lea.vmem %s371_s3, %s299_s14 }
  0x11   : > { %313 = vlog2.f32 %v201_v0  ;;  %v206_v1 = vsub.f32 1.0, %v201_v0  ;;  %v200_v3 = vld [vmem:[%s187_s20] sm:$0xff] }
  0x12   : > { %v211_v8 = vsub.f32 1.0, %v200_v3  ;;  %v202_v13 = vld [vmem:[%s195_s23] sm:$0xff] }
  0x13   : > { %315 = vlog2.f32 %v206_v1 }
  0x1b   : > { %v314_v2 = vpop.eup %313 }
  0x1c   : > { %v204_v4 = vmul.f32 0.6931472, %v314_v2 }
  0x1d   : > { %v316_v5 = vpop.eup %315 }
  0x1e   : > { %v205_v6 = vmax.f32 %v204_v4, -100.0  ;;  %v208_v7 = vmul.f32 0.6931472, %v316_v5 }
  0x20   : > { %v209_v9 = vmax.f32 %v208_v7, -100.0  ;;  %v210_v10 = vmul.f32 %v205_v6, %v200_v3 }
  0x22   : > { %v212_v11 = vmul.f32 %v211_v8, %v209_v9 }
  0x24   : > { %v213_v12 = vadd.f32 %v212_v11, %v210_v10 }
  0x26   : > { %v214_v14 = vsub.f32 0.0, %v213_v12 }
  0x28   : > { %v215_v15 = vmul.f32 %v214_v14, %v202_v13 }
  0x2a   : > { %216 = vst [vmem:[%s199_s26] sm:$0xff] %v215_v15 }
  0x2b PF: > { %s13_s12 = sadd.s32 1, %s323_s12  }
  0x2c   : > { %p10_p4 = scmp.ge.s32.totalorder %s13_s12, 5  }
  0x2e   :  { %12 = sbr.rel (!%p10_p4) target bundleno = 1 (0x1), region = 68 }

</bundles_post_ra>
